<compile_context>
chip_gen: v7x
topology: tpu7x:2x2x1
jax: 0.10.0
libtpu: 0.0.40
codegen_flags: <defaults>
</compile_context>

<pallas_src>
import functools

import jax
import jax.numpy as jnp
from jax.experimental import pallas as pl
from jax.experimental.pallas import tpu as pltpu

KL_PAR = 0.5

_LANES = 512  # lane-dense last dim (multiple of 128)


def _round_up(v, m):
    return -(-v // m) * m


def _default_row_tile():
    """Generation-tuned streaming tile (rows of the (rows, 512) slab)."""
    try:
        kind = jax.devices()[0].device_kind.lower()
    except Exception:
        kind = ""
    # v6e/v7x: 2048x512 f32 = 4 MiB/input/step -> ~16 MiB double-buffered,
    # comfortably under their 32 MiB default scoped-VMEM budget and big enough
    # to hide the ~0.35us per-grid-step overhead at 1.4-3.2 TB/s HBM.
    if "v6" in kind or "v7" in kind:
        return 2048
    # v5e (and unknown): 1024 rows -> ~8 MiB double-buffered, safe under the
    # 16 MiB default scoped-VMEM budget and already near roofline at 820 GB/s.
    return 1024


def _fused_loss_kernel(xr_ref, x_ref, mu_ref, lv_ref,
                       mse_out_ref, kld_out_ref,
                       *, valid_rows, row_tile, ragged):
    i = pl.program_id(0)

    # ---- MSE partial for this tile (pure VPU: sub, mul, vreg adds) ----------
    d = xr_ref[...].astype(jnp.float32) - x_ref[...].astype(jnp.float32)
    dsq = d * d
    if ragged:
        # The final block reads past the end of the array; those rows contain
        # garbage from the VMEM buffer -> mask them to 0 before reducing.
        row_ids = jax.lax.broadcasted_iota(jnp.int32, dsq.shape, 0) + i * row_tile
        dsq = jnp.where(row_ids < valid_rows, dsq, 0.0)
    tr, lanes = dsq.shape
    # Reshape splits only the leading (sublane-major) dim -> layout preserving;
    # the axis-0 sum is plain elementwise vreg adds (no XLU cross-lane reduce).
    mse_out_ref[...] = jnp.sum(dsq.reshape(tr // 8, 8, lanes), axis=0)

    # ---- KLD partial (fused; computed once, on block 0) ---------------------
    # Every program writes its own KLD output block (zeros when not block 0),
    # so no output block is revisited and the grid axis stays "parallel".
    kld_out_ref[...] = jnp.zeros_like(kld_out_ref)

    @pl.when(i == 0)
    def _():
        m = mu_ref[...].astype(jnp.float32)
        lv = lv_ref[...].astype(jnp.float32)
        t = 1.0 + lv - m * m - jnp.exp(lv)   # zero-padded entries contribute 0
        r, c = t.shape
        kld_out_ref[...] = -0.5 * jnp.sum(t.reshape(r // 8, 8, c), axis=0)


def custom_loss(x_recon, x, mu, logvar, kl_par=KL_PAR):
    """Pallas implementation of customLoss.forward.

    Returns (loss_MSE, KL_PAR * loss_KLD), both scalar float32.
    """
    assert x_recon.shape == x.shape
    assert mu.size == logvar.size
    n_elems = x.size
    lanes = _LANES

    # ---- lane-dense slab for the streaming MSE reduction --------------------
    xr_flat = x_recon.reshape(-1)
    x_flat = x.reshape(-1)
    pad = (-n_elems) % lanes
    if pad:
        # Only when unavoidable (< 512 elems). Zero pad on BOTH tensors so the
        # padded diffs are exactly 0; the mean still divides by n_elems.
        xr_flat = jnp.pad(xr_flat, (0, pad))
        x_flat = jnp.pad(x_flat, (0, pad))
    rows = (n_elems + pad) // lanes
    xr2 = xr_flat.reshape(rows, lanes)
    x2 = x_flat.reshape(rows, lanes)

    row_tile = min(_default_row_tile(), _round_up(rows, 8))
    num_blocks = -(-rows // row_tile)
    ragged = (rows % row_tile) != 0

    # ---- mu/logvar: tiny, sublane/lane-dense (r_mu, 128), fully resident ----
    n_lat = mu.size
    mu_flat = mu.reshape(-1).astype(jnp.float32)
    lv_flat = logvar.reshape(-1).astype(jnp.float32)
    lat_pad = (-n_lat) % (8 * 128)
    if lat_pad:
        mu_flat = jnp.pad(mu_flat, (0, lat_pad))
        lv_flat = jnp.pad(lv_flat, (0, lat_pad))
    r_mu = (n_lat + lat_pad) // 128
    mu2 = mu_flat.reshape(r_mu, 128)
    lv2 = lv_flat.reshape(r_mu, 128)
    # Guard: mu/logvar are held fully resident in VMEM inside the kernel.
    assert mu2.size * 4 <= 4 * 1024 * 1024, (
        "latent tensors too large to keep resident in VMEM; tile the KLD term")

    kernel = functools.partial(_fused_loss_kernel, valid_rows=rows,
                               row_tile=row_tile, ragged=ragged)

    itemsize = jnp.dtype(x.dtype).itemsize
    mse_partials, kld_partials = pl.pallas_call(
        kernel,
        out_shape=(
            jax.ShapeDtypeStruct((num_blocks * 8, lanes), jnp.float32),
            jax.ShapeDtypeStruct((num_blocks * 8, 128), jnp.float32),
        ),
        grid_spec=pltpu.PrefetchScalarGridSpec(
            num_scalar_prefetch=0,
            grid=(num_blocks,),
            in_specs=[
                pl.BlockSpec((row_tile, lanes), lambda i: (i, 0)),   # x_recon
                pl.BlockSpec((row_tile, lanes), lambda i: (i, 0)),   # x
                pl.BlockSpec((r_mu, 128), lambda i: (0, 0)),         # mu (resident)
                pl.BlockSpec((r_mu, 128), lambda i: (0, 0)),         # logvar (resident)
            ],
            out_specs=(
                pl.BlockSpec((8, lanes), lambda i: (i, 0)),          # MSE partials
                pl.BlockSpec((8, 128), lambda i: (i, 0)),            # KLD partials
            ),
        ),
        compiler_params=pltpu.CompilerParams(
            dimension_semantics=("parallel",)),
        cost_estimate=pl.CostEstimate(
            flops=3 * n_elems + 6 * n_lat,
            transcendentals=n_lat,
            bytes_accessed=(2 * n_elems * itemsize
                            + num_blocks * 8 * (lanes + 128) * 4
                            + 2 * r_mu * 128 * 4)),
    )(xr2, x2, mu2, lv2)

    # Tiny final cross-lane reductions + 'mean' normalization (original count).
    loss_mse = jnp.sum(mse_partials) / jnp.float32(n_elems)
    loss_kld = jnp.sum(kld_partials[:8])
    return loss_mse, kl_par * loss_kld


if __name__ == "__main__":
    key = jax.random.PRNGKey(0)
    k1, k2, k3, k4 = jax.random.split(key, 4)

    # Small shapes consistent with a VAE forward: NCHW reconstruction + latents.
    x_recon = jax.random.normal(k1, (2, 4, 16, 16), dtype=jnp.float32)
    x = jax.random.normal(k2, (2, 4, 16, 16), dtype=jnp.float32)
    mu = jax.random.normal(k3, (2, 32), dtype=jnp.float32)
    logvar = 0.1 * jax.random.normal(k4, (2, 32), dtype=jnp.float32)

    loss_mse, loss_kld_scaled = custom_loss(x_recon, x, mu, logvar)
    jax.block_until_ready((loss_mse, loss_kld_scaled))

    # Pure-JAX reference check.
    ref_mse = jnp.mean((x_recon - x) ** 2)
    ref_kld = -0.5 * jnp.sum(1.0 + logvar - mu ** 2 - jnp.exp(logvar))
    assert jnp.allclose(loss_mse, ref_mse, rtol=1e-5, atol=1e-5)
    assert jnp.allclose(loss_kld_scaled, KL_PAR * ref_kld, rtol=1e-5, atol=1e-5)

    print("KERNEL_OK")
</pallas_src>

<mosaic_0001>
module attributes {stable_mosaic.version = 11 : i64} {
  func.func @_fused_loss_kernel(%arg0: i32, %arg1: memref<8x512xf32, #tpu.memory_space<vmem>>, %arg2: memref<8x512xf32, #tpu.memory_space<vmem>>, %arg3: memref<8x128xf32, #tpu.memory_space<vmem>>, %arg4: memref<8x128xf32, #tpu.memory_space<vmem>>, %arg5: memref<8x512xf32, #tpu.memory_space<vmem>>, %arg6: memref<8x128xf32, #tpu.memory_space<vmem>>) attributes {dimension_semantics = [#tpu.dimension_semantics<parallel>], iteration_bounds = array<i64: 1>, scalar_prefetch = 0 : i64, scratch_operands = 0 : i64, tpu.core_type = #tpu.core_type<tc>, window_params = [{transform_indices = @transform_0, window_bounds = array<i64: 8, 512>}, {transform_indices = @transform_1, window_bounds = array<i64: 8, 512>}, {pipeline_mode = #tpu.pipeline_mode<synchronous>, transform_indices = @transform_2, window_bounds = array<i64: 8, 128>}, {pipeline_mode = #tpu.pipeline_mode<synchronous>, transform_indices = @transform_3, window_bounds = array<i64: 8, 128>}, {transform_indices = @transform_4, window_bounds = array<i64: 8, 512>}, {transform_indices = @transform_5, window_bounds = array<i64: 8, 128>}]} {
    %c0 = arith.constant 0 : index
    %c0_0 = arith.constant 0 : index
    %0 = vector.load %arg1[%c0, %c0_0] : memref<8x512xf32, #tpu.memory_space<vmem>>, vector<8x512xf32>
    %c0_1 = arith.constant 0 : index
    %c0_2 = arith.constant 0 : index
    %1 = vector.load %arg2[%c0_1, %c0_2] : memref<8x512xf32, #tpu.memory_space<vmem>>, vector<8x512xf32>
    %2 = arith.subf %0, %1 : vector<8x512xf32>
    %3 = arith.mulf %2, %2 : vector<8x512xf32>
    %4 = tpu.iota {dimensions = array<i32: 0>} : vector<8x512xi32>
    %c8_i32 = arith.constant 8 : i32
    %5 = arith.muli %arg0, %c8_i32 : i32
    %6 = vector.broadcast %5 : i32 to vector<8x512xi32>
    %7 = arith.addi %4, %6 : vector<8x512xi32>
    %c4_i32 = arith.constant 4 : i32
    %8 = vector.broadcast %c4_i32 : i32 to vector<8x512xi32>
    %9 = arith.cmpi slt, %7, %8 : vector<8x512xi32>
    %cst = arith.constant 0.000000e+00 : f32
    %10 = vector.broadcast %cst : f32 to vector<8x512xf32>
    %11 = arith.select %9, %3, %10 : vector<8x512xi1>, vector<8x512xf32>
    %12 = vector.shape_cast %11 : vector<8x512xf32> to vector<1x8x512xf32>
    %cst_3 = arith.constant dense<0.000000e+00> : vector<8x512xf32>
    %13 = vector.multi_reduction <add>, %12, %cst_3 [0] : vector<1x8x512xf32> to vector<8x512xf32>
    %c0_4 = arith.constant 0 : index
    %c0_5 = arith.constant 0 : index
    %14 = vector.load %arg5[%c0_4, %c0_5] : memref<8x512xf32, #tpu.memory_space<vmem>>, vector<8x512xf32>
    tpu.vector_store %arg5[%c0_4, %c0_5], %13 {strides = array<i32>} : memref<8x512xf32, #tpu.memory_space<vmem>>, vector<8x512xf32>,
    %cst_6 = arith.constant 0.000000e+00 : f32
    %15 = vector.broadcast %cst_6 : f32 to vector<8x128xf32>
    %c0_7 = arith.constant 0 : index
    %c0_8 = arith.constant 0 : index
    %16 = vector.load %arg6[%c0_7, %c0_8] : memref<8x128xf32, #tpu.memory_space<vmem>>, vector<8x128xf32>
    tpu.vector_store %arg6[%c0_7, %c0_8], %15 {strides = array<i32>} : memref<8x128xf32, #tpu.memory_space<vmem>>, vector<8x128xf32>,
    %c0_i32 = arith.constant 0 : i32
    %17 = arith.cmpi eq, %arg0, %c0_i32 : i32
    %18 = arith.extui %17 : i1 to i32
    %c0_i32_9 = arith.constant 0 : i32
    %19 = arith.cmpi ne, %18, %c0_i32_9 : i32
    scf.if %19 {
      %c0_10 = arith.constant 0 : index
      %c0_11 = arith.constant 0 : index
      %20 = vector.load %arg3[%c0_10, %c0_11] : memref<8x128xf32, #tpu.memory_space<vmem>>, vector<8x128xf32>
      %c0_12 = arith.constant 0 : index
      %c0_13 = arith.constant 0 : index
      %21 = vector.load %arg4[%c0_12, %c0_13] : memref<8x128xf32, #tpu.memory_space<vmem>>, vector<8x128xf32>
      %cst_14 = arith.constant 1.000000e+00 : f32
      %22 = vector.broadcast %cst_14 : f32 to vector<8x128xf32>
      %23 = arith.addf %22, %21 : vector<8x128xf32>
      %24 = arith.mulf %20, %20 : vector<8x128xf32>
      %25 = arith.subf %23, %24 : vector<8x128xf32>
      %26 = math.exp %21 : vector<8x128xf32>
      %27 = arith.subf %25, %26 : vector<8x128xf32>
      %28 = vector.shape_cast %27 : vector<8x128xf32> to vector<1x8x128xf32>
      %cst_15 = arith.constant dense<0.000000e+00> : vector<8x128xf32>
      %29 = vector.multi_reduction <add>, %28, %cst_15 [0] : vector<1x8x128xf32> to vector<8x128xf32>
      %cst_16 = arith.constant -5.000000e-01 : f32
      %30 = vector.broadcast %cst_16 : f32 to vector<8x128xf32>
      %31 = arith.mulf %30, %29 : vector<8x128xf32>
      %c0_17 = arith.constant 0 : index
      %c0_18 = arith.constant 0 : index
      %32 = vector.load %arg6[%c0_17, %c0_18] : memref<8x128xf32, #tpu.memory_space<vmem>>, vector<8x128xf32>
      tpu.vector_store %arg6[%c0_17, %c0_18], %31 {strides = array<i32>} : memref<8x128xf32, #tpu.memory_space<vmem>>, vector<8x128xf32>,
    } else {
    }
    return
  }
  func.func @transform_0(%arg0: i32) -> (i32, i32) {
    %c0_i32 = arith.constant 0 : i32
    %c0_i32_0 = arith.constant 0 : i32
    return %arg0, %c0_i32 : i32, i32
  }
  func.func @transform_1(%arg0: i32) -> (i32, i32) {
    %c0_i32 = arith.constant 0 : i32
    %c0_i32_0 = arith.constant 0 : i32
    return %arg0, %c0_i32 : i32, i32
  }
  func.func @transform_2(%arg0: i32) -> (i32, i32) {
    %c0_i32 = arith.constant 0 : i32
    %c0_i32_0 = arith.constant 0 : i32
    %c0_i32_1 = arith.constant 0 : i32
    return %c0_i32, %c0_i32_0 : i32, i32
  }
  func.func @transform_3(%arg0: i32) -> (i32, i32) {
    %c0_i32 = arith.constant 0 : i32
    %c0_i32_0 = arith.constant 0 : i32
    %c0_i32_1 = arith.constant 0 : i32
    return %c0_i32, %c0_i32_0 : i32, i32
  }
  func.func @transform_4(%arg0: i32) -> (i32, i32) {
    %c0_i32 = arith.constant 0 : i32
    %c0_i32_0 = arith.constant 0 : i32
    return %arg0, %c0_i32 : i32, i32
  }
  func.func @transform_5(%arg0: i32) -> (i32, i32) {
    %c0_i32 = arith.constant 0 : i32
    %c0_i32_0 = arith.constant 0 : i32
    return %arg0, %c0_i32 : i32, i32
  }
}

</mosaic_0001>

<bundles_post_ra>
// kernel: tpu_custom_call.1
= control target key start
LH: loop header
LB: loop body
LE: loop exit
PB: predicated region body
PF: predicated region fallthrough
CT: control target
= control target key end

     0   :  { %11 = vsyncpa [#allocation3], 0  ;;  %s384_s0 = inlined_call_operand.hbm [shape: f32[4,512], index: 0, kind: input, shape index: {}]   ;;  %s385_s1 = inlined_call_operand.hbm [shape: f32[4,512], index: 1, kind: input, shape index: {}]   ;;  %s386_s2 = inlined_call_operand.hbm [shape: f32[8,128], index: 2, kind: input, shape index: {}]   ;;  %s387_s3 = inlined_call_operand.vmem [shape: f32[8,128], index: 3, kind: input, shape index: {}]   ;;  %s388_s4 = inlined_call_operand.hbm [shape: f32[8,512], index: 4, kind: output, shape index: {0}]   ;;  %s389_s5 = inlined_call_operand.hbm [shape: f32[8,128], index: 5, kind: output, shape index: {1}]  }
   0x1   :  { %12 = vsyncpa [#allocation6], 0 }
   0x2   :  { %13 = vsyncpa [#allocation4], 0 }
   0x3   :  { %14 = vsyncpa [#allocation10], 0 }
   0x4   :  { %19 = vsyncadd [#allocation3], 256  ;;  %s280_s18 = smov [#allocation2]   ;;  %s162_s22 = scalar_lea.hbm %s384_s0, 256 }
   0x5   :  { %s20_s19 = sshll.u32 %s280_s18, 4  ;;  %p163_p0 = scmp.ne.s32.totalorder %s384_s0, %s162_s22  ;;  %s21_s19 = int_to_ptr.vmem [resolvable:$true] %s20_s19 }
   0x6   :  { %p166_p1 = scmp.lt.u32.totalorder %s162_s22, %s384_s0 }
   0x8   :  { %p168_p2 = pnand %p166_p1, %p163_p0 }
   0xa   :  { %171 = shalt.err (!%p168_p2)
}
   0xb   :  { %s172_s27 = scalar_lea.vmem %s21_s19, 256  ;;  %s176_s28 = scalar_lea.vmem %s21_s19, 512 }
   0xc   :  { %p173_p3 = scmp.ne.s32.totalorder %s21_s19, %s172_s27  ;;  %p177_p4 = scmp.lt.s32.totalorder %s21_s19, %s21_s19 }
   0xd   :  { %p178_p5 = scmp.lt.s32.totalorder %s176_s28, %s172_s27 }
   0xf   :  { %p179_p6 = por %p178_p5, %p177_p4 }
  0x11   :  { %p180_p7 = pnand %p179_p6, %p173_p3 }
  0x13   :  { %183 = shalt.err (!%p180_p7)
}
  0x14   :  { %s281_s29 = smov 256   ;;  %s282_s30 = smov 16  }
  0x15   :  { %26 = dma.hbm_to_vmem [thread:$0]  %s384_s0, 256, %s21_s19, [#allocation3], %s281_s29, %s281_s29, %s282_s30  }
  0x16   :  { %31 = vsyncadd [#allocation6], 256  ;;  %s283_s8 = smov [#allocation5]   ;;  %s284_s10 = smov [#allocation7]  }
  0x17   :  { %s32_s9 = sshll.u32 %s283_s8, 4  ;;  %s45_s11 = sshll.u32 %s284_s10, 4  ;;  %s33_s9 = int_to_ptr.vmem [resolvable:$true] %s32_s9  ;;  %s46_s11 = int_to_ptr.vmem [resolvable:$true] %s45_s11 }
  0x18   :  { %s184_s14 = scalar_lea.hbm %s385_s1, 256 }
  0x19   :  { %p185_p8 = scmp.ne.s32.totalorder %s385_s1, %s184_s14  ;;  %p188_p9 = scmp.lt.u32.totalorder %s184_s14, %s385_s1 }
  0x1b   :  { %p190_p10 = pnand %p188_p9, %p185_p8 }
  0x1d   :  { %193 = shalt.err (!%p190_p10)
}
  0x1e   :  { %s194_s0 = scalar_lea.vmem %s33_s9, 256  ;;  %s198_s19 = scalar_lea.vmem %s33_s9, 512 }
  0x1f   :  { %p195_p11 = scmp.ne.s32.totalorder %s33_s9, %s194_s0  ;;  %p199_p12 = scmp.lt.s32.totalorder %s33_s9, %s33_s9 }
  0x20   :  { %p200_p13 = scmp.lt.s32.totalorder %s198_s19, %s194_s0 }
  0x22   :  { %p201_p0 = por %p200_p13, %p199_p12 }
  0x24   :  { %p202_p1 = pnand %p201_p0, %p195_p11 }
  0x26   :  { %205 = shalt.err (!%p202_p1)
}
  0x27   :  { %38 = dma.hbm_to_vmem [thread:$0]  %s385_s1, 256, %s33_s9, [#allocation6], %s281_s29, %s281_s29, %s282_s30  }
  0x28   :  { %s206_s24 = scalar_lea.hbm %s386_s2, 128 }
  0x29   :  { %p207_p2 = scmp.ne.s32.totalorder %s386_s2, %s206_s24  ;;  %p210_p3 = scmp.lt.u32.totalorder %s206_s24, %s386_s2 }
  0x2b   :  { %p212_p4 = pnand %p210_p3, %p207_p2 }
  0x2d   :  { %215 = shalt.err (!%p212_p4)
}
  0x2e   :  { %s216_s6 = scalar_lea.vmem %s46_s11, 128  ;;  %p221_p6 = scmp.lt.s32.totalorder %s46_s11, %s46_s11 }
  0x2f   :  { %p217_p5 = scmp.ne.s32.totalorder %s46_s11, %s216_s6  ;;  %p222_p7 = scmp.lt.s32.totalorder %s216_s6, %s216_s6 }
  0x31   :  { %p223_p8 = por %p222_p7, %p221_p6 }
  0x33   :  { %p224_p9 = pnand %p223_p8, %p217_p5 }
  0x35   :  { %227 = shalt.err (!%p224_p9)
}
  0x36   :  { %48 = dma.hbm_to_vmem [thread:$0]  %s386_s2, 128, %s46_s11, [#allocation6]  }
  0x37   :  { %272 = dma.done.wait [#allocation3], 512  }
  0x38   :  { %273 = vsyncadd [#allocation3], 4294966784 }
  0x39   :  { %274 = dma.done.wait [#allocation6], 640  }
  0x3a   :  { %275 = vsyncadd [#allocation6], 4294966656  ;;  %v76_v0 = vlaneseq  ;;  %v60_v1 = vld [vmem:[#allocation2] sm:$0xff]  ;;  %v62_v2 = vld [vmem:[#allocation2 + $0x10] sm:$0xff]  ;;  %s285_s7 = smov [#allocation8]  }
  0x3b   :  { %v64_v3 = vld [vmem:[#allocation5] sm:$0xff]  ;;  %v66_v4 = vld [vmem:[#allocation5 + $0x10] sm:$0xff]  ;;  %v61_v7 = vld [vmem:[#allocation2 + $0x8] sm:$0xff]  ;;  %s128_s8 = sshll.u32 %s285_s7, 4  ;;  %s129_s8 = int_to_ptr.vmem [resolvable:$true] %s128_s8 }
  0x3c   :  { %v68_v5 = vsub.f32 %v60_v1, %v64_v3  ;;  %v77_v6 = vshrl.u32 %v76_v0, 7  ;;  %v63_v8 = vld [vmem:[#allocation2 + $0x18] sm:$0xff]  ;;  %v70_v9 = vsub.f32 %v62_v2, %v66_v4  ;;  %v65_v10 = vld [vmem:[#allocation5 + $0x8] sm:$0xff]  ;;  %v112_v15 = vld [vmem:[%s387_s3] sm:$0xff]  ;;  %s228_s3 = scalar_lea.vmem %s129_s8, 512  ;;  %p233_p11 = scmp.lt.s32.totalorder %s129_s8, %s129_s8 }
  0x3d   :  { %v67_v11 = vld [vmem:[#allocation5 + $0x18] sm:$0xff]  ;;  %v69_v13 = vsub.f32 %v61_v7, %v65_v10  ;;  %v116_v17 = vmul.f32 1.442695, %v112_v15  ;;  %v111_v22 = vld [vmem:[#allocation7] sm:$0xff]  ;;  %v113_v29 = vadd.f32 1.0, %v112_v15  ;;  %p229_p10 = scmp.ne.s32.totalorder %s129_s8, %s228_s3  ;;  %p234_p12 = scmp.lt.s32.totalorder %s228_s3, %s228_s3 }
  0x3e   :  { %v72_v12 = vmul.f32 %v68_v5, %v68_v5  ;;  %v71_v14 = vsub.f32 %v63_v8, %v67_v11  ;;  %v74_v16 = vmul.f32 %v70_v9, %v70_v9  ;;  %vm81_vm0 = vcmp.lt.s32.totalorder %v77_v6, 4 }
  0x3f   :  { %v73_v18 = vmul.f32 %v69_v13, %v69_v13  ;;  %160 = vpow2.f32 %v116_v17  ;;  %v114_v30 = vmul.f32 %v111_v22, %v111_v22  ;;  %p235_p13 = por %p234_p12, %p233_p11 }
  0x40   :  { %v75_v19 = vmul.f32 %v71_v14, %v71_v14  ;;  %v86_v20 = vcombine.low %v72_v12, %v74_v16  ;;  %v87_v21 = vcombine.high %v72_v12, %v74_v16 }
  0x41   :  { %p236_p0 = pnand %p235_p13, %p229_p10 }
  0x42   :  { %v88_v23 = vcombine.low %v73_v18, %v75_v19  ;;  %v89_v24 = vcombine.high %v73_v18, %v75_v19  ;;  %v94_v25 = vsel %vm81_vm0, %v86_v20, 0.0  ;;  %v95_v26 = vsel %vm81_vm0, %v87_v21, 0.0 }
  0x43   :  { %102 = vst [vmem:[#allocation8] sm:$0xff] %v94_v25  ;;  %103 = vst [vmem:[#allocation8 + $0x8] sm:$0xff] %v95_v26 }
  0x44   :  { %v96_v27 = vsel %vm81_vm0, %v88_v23, 0.0  ;;  %v97_v28 = vsel %vm81_vm0, %v89_v24, 0.0 }
  0x45   :  { %104 = vst [vmem:[#allocation8 + $0x10] sm:$0xff] %v96_v27  ;;  %105 = vst [vmem:[#allocation8 + $0x18] sm:$0xff] %v97_v28 }
  0x46   :  { %239 = shalt.err (!%p236_p0)
}
  0x47   :  { %s240_s11 = scalar_lea.hbm %s388_s4, 512 }
  0x48   :  { %p241_p1 = scmp.ne.s32.totalorder %s388_s4, %s240_s11  ;;  %p244_p2 = scmp.lt.u32.totalorder %s240_s11, %s388_s4 }
  0x4a   :  { %p246_p3 = pnand %p244_p2, %p241_p1 }
  0x4c   :  { %249 = shalt.err (!%p246_p3)
}
  0x4d   :  { %131 = dma.vmem_to_hbm [thread:$0]  %s129_s8, 512, %s388_s4, [#allocation4]   ;;  %v115_v31 = vsub.f32 %v113_v29, %v114_v30  ;;  %v161_v32 = vpop.eup %160 }
  0x4e   :  { %s286_s18 = smov [#allocation9]  }
  0x4f   :  { %s138_s0 = sshll.u32 %s286_s18, 4  ;;  %v118_v33 = vsub.f32 %v115_v31, %v161_v32  ;;  %s139_s0 = int_to_ptr.vmem [resolvable:$true] %s138_s0 }
  0x50   :  { %s250_s19 = scalar_lea.vmem %s139_s0, 128  ;;  %p255_p5 = scmp.lt.s32.totalorder %s139_s0, %s139_s0 }
  0x51   :  { %v120_v34 = vmul.f32 -0.5, %v118_v33  ;;  %p251_p4 = scmp.ne.s32.totalorder %s139_s0, %s250_s19  ;;  %p256_p6 = scmp.lt.s32.totalorder %s250_s19, %s250_s19 }
  0x53   :  { %121 = vst [vmem:[#allocation9] sm:$0xff] %v120_v34  ;;  %p257_p7 = por %p256_p6, %p255_p5 }
  0x55   :  { %p258_p8 = pnand %p257_p7, %p251_p4 }
  0x57   :  { %261 = shalt.err (!%p258_p8)
}
  0x58   :  { %s262_s22 = scalar_lea.hbm %s389_s5, 128 }
  0x59   :  { %p263_p9 = scmp.ne.s32.totalorder %s389_s5, %s262_s22  ;;  %p266_p10 = scmp.lt.u32.totalorder %s262_s22, %s389_s5 }
  0x5b   :  { %p268_p11 = pnand %p266_p10, %p263_p9 }
  0x5d   :  { %271 = shalt.err (!%p268_p11)
}
  0x5e   :  { %141 = dma.vmem_to_hbm [thread:$0]  %s139_s0, 128, %s389_s5, [#allocation10]  }
  0x5f   :  { %276 = dma.done.wait [#allocation4], 512  }
  0x60   :  { %277 = vsyncadd [#allocation4], 4294966784 }
  0x61   :  { %278 = dma.done.wait [#allocation10], 128  }
  0x62   :  { %279 = vsyncadd [#allocation10], 4294967168 }
  0x63   :  { %148 = vsyncpa [#allocation3], 1 }
  0x64   :  { %149 = vsyncpa [#allocation6], 1 }
  0x65   :  { %150 = vsyncpa [#allocation4], 1 }
  0x66   :  { %151 = vsyncpa [#allocation10], 1 }

</bundles_post_ra>
